<compile_context>
chip_gen: v7x
topology: tpu7x:2x2x1
jax: 0.10.0
libtpu: 0.0.40
codegen_flags: <defaults>
</compile_context>

<pallas_src>
import jax
import jax.numpy as jnp
from jax import lax
from jax.experimental import pallas as pl
from jax.experimental.pallas import tpu as pltpu


_DEFAULT_VMEM_LIMIT = 48 * 1024 * 1024   # safe default: v7x has 64 MiB physical


def _round_up(x, m):
    return ((x + m - 1) // m) * m


def _tpu_vmem_info():
    """Returns (scoped_vmem_limit_bytes, is_v7x); conservative fallback."""
    try:
        cap = getattr(pltpu.get_tpu_info(), "vmem_capacity_bytes", None)
    except Exception:
        cap = None
    if not cap:
        return _DEFAULT_VMEM_LIMIT, False
    cap = int(cap)
    is_v7x = cap <= 80 * 1024 * 1024          # v7x: 64 MiB/TC; v5e/v6e: 128 MiB
    # Leave ~25% headroom for compiler-internal scratch / double buffers.
    limit = max(32 * 1024 * 1024, min((cap * 3) // 4, 100 * 1024 * 1024))
    return limit, is_v7x


# ---------------------------------------------------------------------------
# Pass 1: fused, packed QKV projection (weight tiled over the 3*D axis).
# ---------------------------------------------------------------------------
def _qkv_proj_kernel(x_ref, w_ref, b_ref, o_ref):
    # One (tm, D) @ (D, tn) MXU matmul per grid step, f32 accumulation,
    # single lane-dense packed output slab (no in-kernel column slicing).
    acc = jnp.dot(x_ref[...], w_ref[...], preferred_element_type=jnp.float32)
    o_ref[...] = (acc + b_ref[...].astype(jnp.float32)).astype(o_ref.dtype)


def _project_qkv(x2d, w_cat, b_cat, vmem_limit):
    M, D = x2d.shape
    threeD = w_cat.shape[1]
    isz = jnp.dtype(x2d.dtype).itemsize

    # Column tile over the packed 3*D output axis (multiple of 256 for the
    # v6e/v7x MXU; pad the column axis when 3*D is awkward).
    if threeD > 512:
        tn = 512 if threeD % 512 == 0 else 256
        threeD_pad = _round_up(threeD, tn)
    else:
        tn, threeD_pad = threeD, threeD

    # Row tile (pad rows when M is large and not a tile multiple).
    if M > 512:
        tm = 512

        def vmem_bytes(tm_, tn_):
            # double-buffered x / W / b / out + f32 accumulator estimate
            return 2 * (tm_ * D + D * tn_ + tn_ + tm_ * tn_) * isz + tm_ * tn_ * 4

        # Trace-time VMEM audit (matters most on v7x's 64 MiB).
        while tm > 128 and vmem_bytes(tm, tn) > int(0.9 * vmem_limit):
            tm //= 2
        M_pad = _round_up(M, tm)
    else:
        tm, M_pad = M, M

    x_in = x2d if M_pad == M else jnp.pad(x2d, ((0, M_pad - M), (0, 0)))
    if threeD_pad != threeD:
        w_cat = jnp.pad(w_cat, ((0, 0), (0, threeD_pad - threeD)))
        b_cat = jnp.pad(b_cat, ((0, 0), (0, threeD_pad - threeD)))

    cost = pl.CostEstimate(
        flops=2 * M_pad * D * threeD_pad,
        transcendentals=0,
        bytes_accessed=isz * (M_pad * D * (threeD_pad // tn)   # x re-read per col tile
                              + D * threeD_pad + threeD_pad + M_pad * threeD_pad),
    )

    out = pl.pallas_call(
        _qkv_proj_kernel,
        out_shape=jax.ShapeDtypeStruct((M_pad, threeD_pad), x2d.dtype),
        grid_spec=pltpu.PrefetchScalarGridSpec(
            num_scalar_prefetch=0,
            grid=(M_pad // tm, threeD_pad // tn),
            in_specs=[
                pl.BlockSpec((tm, D), lambda i, j: (i, 0)),     # x rows
                pl.BlockSpec((D, tn), lambda i, j: (0, j)),     # W_cat column tile
                pl.BlockSpec((1, tn), lambda i, j: (0, j)),     # b_cat column tile
            ],
            out_specs=pl.BlockSpec((tm, tn), lambda i, j: (i, j)),
        ),
        compiler_params=pltpu.CompilerParams(
            dimension_semantics=("parallel", "parallel"),
            vmem_limit_bytes=vmem_limit,
        ),
        cost_estimate=cost,
    )(x_in, w_cat, b_cat)

    return out[:M, :threeD]


# ---------------------------------------------------------------------------
# Pass 2: flash-style attention with online softmax.
# ---------------------------------------------------------------------------
def _make_flash_kernel(kv_len, tkv, need_mask):
    def kernel(q_ref, k_ref, v_ref, o_ref, m_ref, l_ref, acc_ref):
        kv = pl.program_id(2)

        @pl.when(kv == 0)
        def _init():
            m_ref[...] = jnp.full_like(m_ref, -jnp.inf)
            l_ref[...] = jnp.zeros_like(l_ref)
            acc_ref[...] = jnp.zeros_like(acc_ref)

        q = q_ref[...]                    # (tq, D)  batch dim squeezed, pre-scaled
        k = k_ref[...]                    # (tkv, D)
        v = v_ref[...]                    # (tkv, D)

        # Contract the shared feature axis directly -- no in-kernel K transpose.
        s = lax.dot_general(q, k, (((1,), (1,)), ((), ())),
                            preferred_element_type=jnp.float32)   # (tq, tkv) f32

        if need_mask:
            kv_idx = kv * tkv + lax.broadcasted_iota(jnp.int32, s.shape, 1)
            s = jnp.where(kv_idx < kv_len, s, -jnp.inf)

        m_prev = m_ref[...]
        m_new = jnp.maximum(m_prev, jnp.max(s, axis=-1, keepdims=True))
        alpha = jnp.exp(m_prev - m_new)
        p = jnp.exp(s - m_new)                                    # f32 softmax math
        l_ref[...] = alpha * l_ref[...] + jnp.sum(p, axis=-1, keepdims=True)
        acc_ref[...] = alpha * acc_ref[...] + jnp.dot(
            p.astype(v.dtype), v, preferred_element_type=jnp.float32)
        m_ref[...] = m_new

        @pl.when(kv == pl.num_programs(2) - 1)
        def _finalize():
            # Exact reciprocal keeps the tight f32 test tolerance; flip to
            # approx=True (EUP slot, effectively free) once looser tolerances OK.
            o_ref[...] = (acc_ref[...] * pl.reciprocal(l_ref[...], approx=False)
                          ).astype(o_ref.dtype)

    return kernel


def _flash_attention(q, k, v, vmem_limit, is_v7x):
    B, S, D = q.shape
    isz = jnp.dtype(q.dtype).itemsize

    if S <= 512:
        tq = tkv = S
        S_pad = S
    else:
        S_pad = _round_up(S, 512)          # lane/MXU-friendly padding (+ key mask)
        tq, tkv = 512, 256                 # tkv=256 == one v6e/v7x MXU tile

        def vmem_bytes(tq_, tkv_):
            return (2 * tq_ * D * isz          # q (double-buffered)
                    + 2 * 2 * tkv_ * D * isz   # k, v
                    + 2 * tq_ * D * isz        # out
                    + tq_ * D * 4 + 2 * tq_ * 4)

        # Trace-time VMEM audit; shrink tq first, keep tkv at a full MXU tile.
        while tq > 128 and tq > tkv and vmem_bytes(tq, tkv) > int(0.8 * vmem_limit):
            tq //= 2
        while tkv > 128 and vmem_bytes(tq, tkv) > int(0.8 * vmem_limit):
            tkv //= 2

    if S_pad != S:
        pad = ((0, 0), (0, S_pad - S), (0, 0))
        q = jnp.pad(q, pad)
        k = jnp.pad(k, pad)
        v = jnp.pad(v, pad)

    n_q_tiles = S_pad // tq
    cost = pl.CostEstimate(
        flops=4 * B * S_pad * S_pad * D,
        transcendentals=B * S_pad * S_pad,
        # q + out once, K/V re-read once per q tile.
        bytes_accessed=isz * B * S_pad * D * (2 + 2 * n_q_tiles),
    )

    # v7x has 2 TensorCores/chip: shard the batch axis across cores there.
    core_parallel = getattr(pltpu, "CORE_PARALLEL", None)
    if is_v7x and core_parallel is not None and B >= 2:
        dim_sem = (core_parallel, pltpu.PARALLEL, pltpu.ARBITRARY)
    else:
        dim_sem = ("parallel", "parallel", "arbitrary")

    kernel = _make_flash_kernel(S, tkv, S_pad != S)
    out = pl.pallas_call(
        kernel,
        out_shape=jax.ShapeDtypeStruct((B, S_pad, D), q.dtype),
        grid_spec=pltpu.PrefetchScalarGridSpec(
            num_scalar_prefetch=0,
            grid=(B, S_pad // tq, S_pad // tkv),
            in_specs=[
                pl.BlockSpec((None, tq, D), lambda b, qi, ki: (b, qi, 0)),
                pl.BlockSpec((None, tkv, D), lambda b, qi, ki: (b, ki, 0)),
                pl.BlockSpec((None, tkv, D), lambda b, qi, ki: (b, ki, 0)),
            ],
            out_specs=pl.BlockSpec((None, tq, D), lambda b, qi, ki: (b, qi, 0)),
            scratch_shapes=[
                pltpu.VMEM((tq, 1), jnp.float32),   # running max m
                pltpu.VMEM((tq, 1), jnp.float32),   # running denom l
                pltpu.VMEM((tq, D), jnp.float32),   # unnormalized output acc
            ],
        ),
        compiler_params=pltpu.CompilerParams(
            dimension_semantics=dim_sem,
            vmem_limit_bytes=vmem_limit,
        ),
        cost_estimate=cost,
    )(q, k, v)

    return out[:, :S, :] if S_pad != S else out


# ---------------------------------------------------------------------------
# Public wrapper matching the PyTorch SelfAttention forward.
# ---------------------------------------------------------------------------
@jax.jit
def self_attention(x, wq, bq, wk, bk, wv, bv):
    B, S, D = x.shape
    scale = 1.0 / (D ** 0.5)
    vmem_limit, is_v7x = _tpu_vmem_info()

    # Pre-transpose once to (in, out).  Fold the 1/sqrt(D) attention scale into
    # the Q projection BEFORE any dtype cast (exact algebraic rewrite, single
    # rounding).  Pack as one (D, 3D) weight so pass 1 is a single wide GEMM.
    w_cat = jnp.concatenate(
        [(wq.T * scale).astype(x.dtype), wk.T.astype(x.dtype), wv.T.astype(x.dtype)],
        axis=1)                                          # (D, 3D)
    b_cat = jnp.concatenate(
        [(bq * scale).astype(x.dtype), bk.astype(x.dtype), bv.astype(x.dtype)]
    ).reshape(1, 3 * D)

    # Pass 1: packed QKV projection on flattened (B*S, D) rows.
    qkv = _project_qkv(x.reshape(B * S, D), w_cat, b_cat, vmem_limit)
    q = qkv[:, :D].reshape(B, S, D)        # XLA-side split: free layout plumbing
    k = qkv[:, D:2 * D].reshape(B, S, D)
    v = qkv[:, 2 * D:3 * D].reshape(B, S, D)

    # Pass 2: tiled flash attention (projections are NOT recomputed per tile).
    # TODO(synk): optionally fuse the Q projection into the flash kernel when
    # attention is memory-bound (small D / short S).
    return _flash_attention(q, k, v, vmem_limit, is_v7x)


def self_attention_ref(x, wq, bq, wk, bk, wv, bv):
    # Pure-JAX reference matching the PyTorch forward.
    q = jnp.einsum("bsd,ed->bse", x, wq) + bq
    k = jnp.einsum("bsd,ed->bse", x, wk) + bk
    v = jnp.einsum("bsd,ed->bse", x, wv) + bv
    d = x.shape[-1]
    scores = jnp.einsum("bqe,bke->bqk", q, k) / (d ** 0.5)
    attn = jax.nn.softmax(scores, axis=2)
    return jnp.einsum("bqk,bke->bqe", attn, v)


if __name__ == "__main__":
    B, S, D = 2, 8, 32
    key = jax.random.PRNGKey(0)
    kx, k1, k2, k3, k4, k5, k6 = jax.random.split(key, 7)

    x = jax.random.normal(kx, (B, S, D), dtype=jnp.float32)

    # Deterministic parameter init (uniform, like PyTorch Linear default range).
    bound = 1.0 / (D ** 0.5)
    wq = jax.random.uniform(k1, (D, D), jnp.float32, -bound, bound)
    bq = jax.random.uniform(k2, (D,), jnp.float32, -bound, bound)
    wk = jax.random.uniform(k3, (D, D), jnp.float32, -bound, bound)
    bk = jax.random.uniform(k4, (D,), jnp.float32, -bound, bound)
    wv = jax.random.uniform(k5, (D, D), jnp.float32, -bound, bound)
    bv = jax.random.uniform(k6, (D,), jnp.float32, -bound, bound)

    out = self_attention(x, wq, bq, wk, bk, wv, bv)
    jax.block_until_ready(out)

    ref = self_attention_ref(x, wq, bq, wk, bk, wv, bv)
    assert out.shape == (B, S, D)
    assert jnp.allclose(out, ref, atol=2e-5, rtol=2e-5), float(
        jnp.max(jnp.abs(out - ref)))

    print("KERNEL_OK")
</pallas_src>

<mosaic_0001>
module attributes {stable_mosaic.version = 11 : i64} {
  func.func @_qkv_proj_kernel(%arg0: i32, %arg1: i32, %arg2: memref<16x32xf32, #tpu.memory_space<vmem>>, %arg3: memref<32x96xf32, #tpu.memory_space<vmem>>, %arg4: memref<1x96xf32, #tpu.memory_space<vmem>>, %arg5: memref<16x96xf32, #tpu.memory_space<vmem>>) attributes {dimension_semantics = [#tpu.dimension_semantics<parallel>, #tpu.dimension_semantics<parallel>], iteration_bounds = array<i64: 1, 1>, scalar_prefetch = 0 : i64, scratch_operands = 0 : i64, tpu.core_type = #tpu.core_type<tc>, window_params = [{transform_indices = @transform_0, window_bounds = array<i64: 16, 32>}, {transform_indices = @transform_1, window_bounds = array<i64: 32, 96>}, {transform_indices = @transform_2, window_bounds = array<i64: 1, 96>}, {transform_indices = @transform_3, window_bounds = array<i64: 16, 96>}]} {
    %c0 = arith.constant 0 : index
    %c0_0 = arith.constant 0 : index
    %0 = vector.load %arg2[%c0, %c0_0] : memref<16x32xf32, #tpu.memory_space<vmem>>, vector<16x32xf32>
    %c0_1 = arith.constant 0 : index
    %c0_2 = arith.constant 0 : index
    %1 = vector.load %arg3[%c0_1, %c0_2] : memref<32x96xf32, #tpu.memory_space<vmem>>, vector<32x96xf32>
    %cst = arith.constant dense<0.000000e+00> : vector<16x96xf32>
    %2 = tpu.matmul %0, %1, %cst {dimension_numbers = #tpu.dot_dimension_numbers<[1], [0], [0], [1], [0, 0, 1, 1], [], []>} : vector<16x32xf32>, vector<32x96xf32>, vector<16x96xf32> -> vector<16x96xf32>
    %c0_3 = arith.constant 0 : index
    %c0_4 = arith.constant 0 : index
    %3 = vector.load %arg4[%c0_3, %c0_4] : memref<1x96xf32, #tpu.memory_space<vmem>>, vector<1x96xf32>
    %4 = vector.broadcast %3 : vector<1x96xf32> to vector<16x96xf32>
    %5 = arith.addf %2, %4 : vector<16x96xf32>
    %c0_5 = arith.constant 0 : index
    %c0_6 = arith.constant 0 : index
    %6 = vector.load %arg5[%c0_5, %c0_6] : memref<16x96xf32, #tpu.memory_space<vmem>>, vector<16x96xf32>
    tpu.vector_store %arg5[%c0_5, %c0_6], %5 {strides = array<i32>} : memref<16x96xf32, #tpu.memory_space<vmem>>, vector<16x96xf32>,
    return
  }
  func.func @transform_0(%arg0: i32, %arg1: i32) -> (i32, i32) {
    %c0_i32 = arith.constant 0 : i32
    %c0_i32_0 = arith.constant 0 : i32
    return %arg0, %c0_i32 : i32, i32
  }
  func.func @transform_1(%arg0: i32, %arg1: i32) -> (i32, i32) {
    %c0_i32 = arith.constant 0 : i32
    %c0_i32_0 = arith.constant 0 : i32
    return %c0_i32, %arg1 : i32, i32
  }
  func.func @transform_2(%arg0: i32, %arg1: i32) -> (i32, i32) {
    %c0_i32 = arith.constant 0 : i32
    %c0_i32_0 = arith.constant 0 : i32
    return %c0_i32, %arg1 : i32, i32
  }
  func.func @transform_3(%arg0: i32, %arg1: i32) -> (i32, i32) {
    %c0_i32 = arith.constant 0 : i32
    return %arg0, %arg1 : i32, i32
  }
}

module attributes {stable_mosaic.version = 11 : i64} {
  func.func @kernel(%arg0: i32, %arg1: i32, %arg2: i32, %arg3: memref<1x8x32xf32, #tpu.memory_space<vmem>>, %arg4: memref<1x8x32xf32, #tpu.memory_space<vmem>>, %arg5: memref<1x8x32xf32, #tpu.memory_space<vmem>>, %arg6: memref<1x8x32xf32, #tpu.memory_space<vmem>>, %arg7: memref<8x1xf32, #tpu.memory_space<vmem>>, %arg8: memref<8x1xf32, #tpu.memory_space<vmem>>, %arg9: memref<8x32xf32, #tpu.memory_space<vmem>>) attributes {dimension_semantics = [#tpu.dimension_semantics<parallel>, #tpu.dimension_semantics<parallel>, #tpu.dimension_semantics<arbitrary>], iteration_bounds = array<i64: 2, 1, 1>, scalar_prefetch = 0 : i64, scratch_operands = 3 : i64, tpu.core_type = #tpu.core_type<tc>, window_params = [{transform_indices = @transform_0, window_bounds = array<i64: 1, 8, 32>}, {transform_indices = @transform_1, window_bounds = array<i64: 1, 8, 32>}, {transform_indices = @transform_2, window_bounds = array<i64: 1, 8, 32>}, {transform_indices = @transform_3, window_bounds = array<i64: 1, 8, 32>}]} {
    %c0_i32 = arith.constant 0 : i32
    %0 = arith.cmpi eq, %arg2, %c0_i32 : i32
    %1 = arith.extui %0 : i1 to i32
    %c0_i32_0 = arith.constant 0 : i32
    %2 = arith.cmpi ne, %1, %c0_i32_0 : i32
    scf.if %2 {
      %cst_26 = arith.constant 0xFF800000 : f32
      %35 = vector.broadcast %cst_26 : f32 to vector<8x1xf32>
      %c0_27 = arith.constant 0 : index
      %c0_28 = arith.constant 0 : index
      %36 = vector.load %arg7[%c0_27, %c0_28] : memref<8x1xf32, #tpu.memory_space<vmem>>, vector<8x1xf32>
      tpu.vector_store %arg7[%c0_27, %c0_28], %35 {strides = array<i32>} : memref<8x1xf32, #tpu.memory_space<vmem>>, vector<8x1xf32>,
      %cst_29 = arith.constant 0.000000e+00 : f32
      %37 = vector.broadcast %cst_29 : f32 to vector<8x1xf32>
      %c0_30 = arith.constant 0 : index
      %c0_31 = arith.constant 0 : index
      %38 = vector.load %arg8[%c0_30, %c0_31] : memref<8x1xf32, #tpu.memory_space<vmem>>, vector<8x1xf32>
      tpu.vector_store %arg8[%c0_30, %c0_31], %37 {strides = array<i32>} : memref<8x1xf32, #tpu.memory_space<vmem>>, vector<8x1xf32>,
      %cst_32 = arith.constant 0.000000e+00 : f32
      %39 = vector.broadcast %cst_32 : f32 to vector<8x32xf32>
      %c0_33 = arith.constant 0 : index
      %c0_34 = arith.constant 0 : index
      %40 = vector.load %arg9[%c0_33, %c0_34] : memref<8x32xf32, #tpu.memory_space<vmem>>, vector<8x32xf32>
      tpu.vector_store %arg9[%c0_33, %c0_34], %39 {strides = array<i32>} : memref<8x32xf32, #tpu.memory_space<vmem>>, vector<8x32xf32>,
    } else {
    }
    %c0 = arith.constant 0 : index
    %c0_1 = arith.constant 0 : index
    %c0_2 = arith.constant 0 : index
    %3 = vector.load %arg3[%c0, %c0_1, %c0_2] : memref<1x8x32xf32, #tpu.memory_space<vmem>>, vector<1x8x32xf32>
    %4 = vector.shape_cast %3 : vector<1x8x32xf32> to vector<8x32xf32>
    %c0_3 = arith.constant 0 : index
    %c0_4 = arith.constant 0 : index
    %c0_5 = arith.constant 0 : index
    %5 = vector.load %arg4[%c0_3, %c0_4, %c0_5] : memref<1x8x32xf32, #tpu.memory_space<vmem>>, vector<1x8x32xf32>
    %6 = vector.shape_cast %5 : vector<1x8x32xf32> to vector<8x32xf32>
    %c0_6 = arith.constant 0 : index
    %c0_7 = arith.constant 0 : index
    %c0_8 = arith.constant 0 : index
    %7 = vector.load %arg5[%c0_6, %c0_7, %c0_8] : memref<1x8x32xf32, #tpu.memory_space<vmem>>, vector<1x8x32xf32>
    %8 = vector.shape_cast %7 : vector<1x8x32xf32> to vector<8x32xf32>
    %cst = arith.constant dense<0.000000e+00> : vector<8x8xf32>
    %9 = tpu.matmul %4, %6, %cst {dimension_numbers = #tpu.dot_dimension_numbers<[1], [1], [0], [0], [0, 0, 1, 0], [], []>} : vector<8x32xf32>, vector<8x32xf32>, vector<8x8xf32> -> vector<8x8xf32>
    %c0_9 = arith.constant 0 : index
    %c0_10 = arith.constant 0 : index
    %10 = vector.load %arg7[%c0_9, %c0_10] : memref<8x1xf32, #tpu.memory_space<vmem>>, vector<8x1xf32>
    %cst_11 = arith.constant dense<0xFF800000> : vector<8xf32>
    %11 = vector.multi_reduction <maximumf>, %9, %cst_11 [1] : vector<8x8xf32> to vector<8xf32>
    %12 = vector.shape_cast %11 : vector<8xf32> to vector<8x1xf32>
    %13 = arith.maximumf %10, %12 : vector<8x1xf32>
    %14 = arith.subf %10, %13 : vector<8x1xf32>
    %15 = math.exp %14 : vector<8x1xf32>
    %16 = vector.broadcast %13 : vector<8x1xf32> to vector<8x8xf32>
    %17 = arith.subf %9, %16 : vector<8x8xf32>
    %18 = math.exp %17 : vector<8x8xf32>
    %c0_12 = arith.constant 0 : index
    %c0_13 = arith.constant 0 : index
    %19 = vector.load %arg8[%c0_12, %c0_13] : memref<8x1xf32, #tpu.memory_space<vmem>>, vector<8x1xf32>
    %20 = arith.mulf %15, %19 : vector<8x1xf32>
    %cst_14 = arith.constant dense<0.000000e+00> : vector<8xf32>
    %21 = vector.multi_reduction <add>, %18, %cst_14 [1] : vector<8x8xf32> to vector<8xf32>
    %22 = vector.shape_cast %21 : vector<8xf32> to vector<8x1xf32>
    %23 = arith.addf %20, %22 : vector<8x1xf32>
    %c0_15 = arith.constant 0 : index
    %c0_16 = arith.constant 0 : index
    %24 = vector.load %arg8[%c0_15, %c0_16] : memref<8x1xf32, #tpu.memory_space<vmem>>, vector<8x1xf32>
    tpu.vector_store %arg8[%c0_15, %c0_16], %23 {strides = array<i32>} : memref<8x1xf32, #tpu.memory_space<vmem>>, vector<8x1xf32>,
    %c0_17 = arith.constant 0 : index
    %c0_18 = arith.constant 0 : index
    %25 = vector.load %arg9[%c0_17, %c0_18] : memref<8x32xf32, #tpu.memory_space<vmem>>, vector<8x32xf32>
    %26 = vector.broadcast %15 : vector<8x1xf32> to vector<8x32xf32>
    %27 = arith.mulf %26, %25 : vector<8x32xf32>
    %cst_19 = arith.constant dense<0.000000e+00> : vector<8x32xf32>
    %28 = tpu.matmul %18, %8, %cst_19 {dimension_numbers = #tpu.dot_dimension_numbers<[1], [0], [0], [1], [0, 0, 1, 1], [], []>} : vector<8x8xf32>, vector<8x32xf32>, vector<8x32xf32> -> vector<8x32xf32>
    %29 = arith.addf %27, %28 : vector<8x32xf32>
    %c0_20 = arith.constant 0 : index
    %c0_21 = arith.constant 0 : index
    %30 = vector.load %arg9[%c0_20, %c0_21] : memref<8x32xf32, #tpu.memory_space<vmem>>, vector<8x32xf32>
    tpu.vector_store %arg9[%c0_20, %c0_21], %29 {strides = array<i32>} : memref<8x32xf32, #tpu.memory_space<vmem>>, vector<8x32xf32>,
    %c0_22 = arith.constant 0 : index
    %c0_23 = arith.constant 0 : index
    %31 = vector.load %arg7[%c0_22, %c0_23] : memref<8x1xf32, #tpu.memory_space<vmem>>, vector<8x1xf32>
    tpu.vector_store %arg7[%c0_22, %c0_23], %13 {strides = array<i32>} : memref<8x1xf32, #tpu.memory_space<vmem>>, vector<8x1xf32>,
    %c0_i32_24 = arith.constant 0 : i32
    %32 = arith.cmpi eq, %arg2, %c0_i32_24 : i32
    %33 = arith.extui %32 : i1 to i32
    %c0_i32_25 = arith.constant 0 : i32
    %34 = arith.cmpi ne, %33, %c0_i32_25 : i32
    scf.if %34 {
      %c0_26 = arith.constant 0 : index
      %c0_27 = arith.constant 0 : index
      %35 = vector.load %arg9[%c0_26, %c0_27] : memref<8x32xf32, #tpu.memory_space<vmem>>, vector<8x32xf32>
      %c0_28 = arith.constant 0 : index
      %c0_29 = arith.constant 0 : index
      %36 = vector.load %arg8[%c0_28, %c0_29] : memref<8x1xf32, #tpu.memory_space<vmem>>, vector<8x1xf32>
      %37 = tpu.reciprocal %36 : vector<8x1xf32> -> vector<8x1xf32>
      %38 = vector.broadcast %37 : vector<8x1xf32> to vector<8x32xf32>
      %39 = arith.mulf %35, %38 : vector<8x32xf32>
      %c0_30 = arith.constant 0 : index
      %c0_31 = arith.constant 0 : index
      %c0_32 = arith.constant 0 : index
      %40 = vector.load %arg6[%c0_30, %c0_31, %c0_32] : memref<1x8x32xf32, #tpu.memory_space<vmem>>, vector<1x8x32xf32>
      %41 = vector.shape_cast %40 : vector<1x8x32xf32> to vector<8x32xf32>
      %42 = vector.shape_cast %39 : vector<8x32xf32> to vector<1x8x32xf32>
      tpu.vector_store %arg6[%c0_30, %c0_31, %c0_32], %42 {strides = array<i32>} : memref<1x8x32xf32, #tpu.memory_space<vmem>>, vector<1x8x32xf32>,
    } else {
    }
    return
  }
  func.func @transform_0(%arg0: i32, %arg1: i32, %arg2: i32) -> (i32, i32, i32) {
    %c0_i32 = arith.constant 0 : i32
    %c0_i32_0 = arith.constant 0 : i32
    return %arg0, %arg1, %c0_i32 : i32, i32, i32
  }
  func.func @transform_1(%arg0: i32, %arg1: i32, %arg2: i32) -> (i32, i32, i32) {
    %c0_i32 = arith.constant 0 : i32
    %c0_i32_0 = arith.constant 0 : i32
    return %arg0, %arg2, %c0_i32 : i32, i32, i32
  }
  func.func @transform_2(%arg0: i32, %arg1: i32, %arg2: i32) -> (i32, i32, i32) {
    %c0_i32 = arith.constant 0 : i32
    %c0_i32_0 = arith.constant 0 : i32
    return %arg0, %arg2, %c0_i32 : i32, i32, i32
  }
  func.func @transform_3(%arg0: i32, %arg1: i32, %arg2: i32) -> (i32, i32, i32) {
    %c0_i32 = arith.constant 0 : i32
    %c0_i32_0 = arith.constant 0 : i32
    return %arg0, %arg1, %c0_i32 : i32, i32, i32
  }
}

</mosaic_0001>

<bundles_post_ra>
// kernel: self_attention.3
= control target key start
LH: loop header
LB: loop body
LE: loop exit
PB: predicated region body
PF: predicated region fallthrough
CT: control target
= control target key end

     0   :  { %8 = vsyncpa [#allocation6], 0  ;;  %s915_s0 = inlined_call_operand.vmem [shape: f32[2,8,32], index: 0, kind: input, shape index: {}]   ;;  %s916_s1 = inlined_call_operand.vmem [shape: f32[2,8,32], index: 1, kind: input, shape index: {}]   ;;  %s917_s2 = inlined_call_operand.vmem [shape: f32[2,8,32], index: 2, kind: input, shape index: {}]   ;;  %s918_s3 = inlined_call_operand.hbm [shape: f32[2,8,32], index: 3, kind: output, shape index: {}]  }
   0x1   :  { %10 = vsyncpa [#allocation6 + $0x1], 0  ;;  %s785_s12 = smov 0   ;;  %s787_s13 = smov 0  }
   0x2   :  { %s789_s14 = smov 0   ;;  %s791_s15 = smov 0  }
   0x3   :  { %s793_s16 = smov 0   ;;  %s795_s17 = smov 0  }
   0x4 LB: > { %s583_s18 = sadd.s32 4294967295, %s758_s17   ;;  %s584_s19 = sadd.s32 4294967294, %s758_s17   ;;  %s758_s17 = sphi %s795_s17, %s16_s17   ;;  %s754_s16 = sphi %s793_s16, %s925_s16   ;;  %s750_s15 = sphi %s791_s15, %s924_s15   ;;  %s746_s14 = sphi %s789_s14, %s923_s14   ;;  %s742_s13 = sphi %s787_s13, %s922_s13   ;;  %s738_s12 = sphi %s785_s12, %s921_s12  }
   0x5   : > { %s35_s20 = sadd.s32 1, %s754_s16  ;;  %s128_s21 = sadd.s32 1, %s746_s14 }
   0x6   : > { %p37_p0 = scmp.ge.s32.totalorder %s35_s20, 2  ;;  %p138_p1 = scmp.ne.s32.totalorder %s746_s14, %s742_s13 }
   0x7   : > { %p139_p2 = scmp.eq.s32.totalorder %s583_s18, 1  ;;  %p144_p3 = scmp.ne.s32.totalorder %s742_s13, %s738_s12 }
   0x8   : > { %s927_s20 = smov (%p37_p0, %s35_s20), 0  ;;  %p145_p5 = scmp.eq.s32.totalorder %s584_s19, 1 }
   0x9   : > { %p825_p4 = por %p139_p2, %p138_p1  ;;  %s123_s23 = ssub.s32 %s754_s16, %s927_s20 }
   0xa   : > { %p587_p6 = scmp.ge.s32.totalorder %s758_s17, 1  ;;  %p126_p7 = scmp.eq.s32.totalorder %s123_s23, 0 }
   0xb   : > { %p832_p8 = por %p145_p5, %p144_p3  ;;  %p193_p9 = scmp.lt.s32.totalorder %s758_s17, 3 }
   0xc   : > { %s838_s25 = scalar_select %p126_p7, %s746_s14, %s128_s21  }
   0xd   : > { %p194_p10 = pnand %p587_p6, %p193_p9 }
   0xe   : > { %p233_p11 = scmp.lt.s32.totalorder (!%p194_p10), %s750_s15, 1  ;;  %vm261_vm0 = vcmask (!%p194_p10), 261120   ;;  %v760_v0 = vmov (!%p194_p10), 0.0   ;;  %vm761_vm1 = vmmov (!%p194_p10), 0   ;;  %vm258_vm2 = vcmask (!%p194_p10), 7168   ;;  %s230_s10 = sand.u32 (!%p194_p10), 1, %s742_s13  }
   0xf   : > { %197 = sbr.rel (%p194_p10) target bundleno = 838 (0x346), region = 32  ;;  %603 = vmatprep.subr.mxu0 (!%p194_p10), %v760_v0  ;;  %262 = vst.msk [vmem:[#allocation4] sm:$0xff] (!%p194_p10), %vm261_vm0, %v760_v0  ;;  %605 = vmatprep.mubr.msk.f32.mxu0 (!%p194_p10), %vm761_vm1, %v760_v0  ;;  %v762_v3 = vmov (!%p194_p10), -inf   ;;  %vm344_vm3 = vcmask (!%p194_p10), 64512   ;;  %v763_v7 = vmov (!%p194_p10), 0   ;;  %s588_s11 = sshll.u32 (!%p194_p10), %s230_s10, 3 }
  0x10   : > { %608 = vmatprep.subr.mxu1 (!%p194_p10), %v760_v0  ;;  %610 = vmatprep.mubr.msk.f32.mxu1 (!%p194_p10), %vm761_vm1, %v760_v0  ;;  %259 = vst.msk [vmem:[#allocation2] sm:$0xff] (!%p194_p10), %vm258_vm2, %v762_v3  ;;  %260 = vst.msk [vmem:[#allocation3] sm:$0xff] (!%p194_p10), %vm258_vm2, %v760_v0  ;;  %s596_s18 = sshll.u32 (!%p194_p10), %s750_s15, 7  ;;  %s232_s19 = scalar_lea.vmem (!%p194_p10), [#allocation5], %s588_s11 }
  0x11   : > { %672 = vset.pattern.permute.xlu0 (!%p194_p10), %v763_v7  ;;  %673 = vset.pattern.permute.xlu1 (!%p194_p10), %v763_v7  ;;  %s479_s21 = sshll.u32 (!%p194_p10), %s232_s19, 4  ;;  %s465_s28 = scalar_lea.sflag (!%p194_p10), [#allocation6], %s230_s10  ;;  %s869_s21 = int_to_ptr.vmem [resolvable:$true] %s479_s21 }
  0x12   : > { %s680_s29 = scalar_lea.vmem (!%p194_p10), %s869_s21, 128 }
  0x13   : > { %p681_p12 = scmp.ne.s32.totalorder (!%p194_p10), %s869_s21, %s680_s29 }
  0x15   : > { %p682_p13 = pnand (!%p194_p10), %p681_p12, %p825_p4 }
  0x16   : > { %s234_s26 = scalar_select %p233_p11, %s750_s15, 1  ;;  %v368_v26 = vld [vmem:[#allocation4] sm:$0xff] }
  0x17   : > { %v343_v8 = vld [vmem:[#allocation2] sm:$0xff]  ;;  %v360_v20 = vld [vmem:[#allocation3] sm:$0xff]  ;;  %p683_p0 = pneg %p682_p13  ;;  %s764_s15 = smov [#allocation5]  }
  0x18   : > { %s589_s27 = sshll.u32 %s234_s26, 3 }
  0x19   : > { %s246_s30 = scalar_lea.vmem %s916_s1, %s589_s27  ;;  %s239_s6 = scalar_lea.vmem %s915_s0, %s589_s27 }
  0x1a   : > { %v264_v1 = vld [vmem:[%s246_s30] sm:$0xff]  ;;  %s253_s9 = scalar_lea.vmem %s917_s2, %s589_s27  ;;  %s867_s27 = scalar_lea.hbm %s918_s3, %s596_s18 }
  0x1b   : > { %604 = vmatpush3.xpose.msk.msra.mxu0 %vm261_vm0, %v264_v1  ;;  %v263_v2 = vld [vmem:[%s239_s6] sm:$0xff]  ;;  %s684_s30 = sshll.u32 %s764_s15, 4  ;;  %s685_s30 = int_to_ptr.vmem [resolvable:$false] %s684_s30 }
  0x1c   : > { %v265_v12 = vld [vmem:[%s253_s9] sm:$0xff]  ;;  %s686_s4 = scalar_lea.vmem %s685_s30, 256  ;;  %p687_p1 = scmp.lt.s32.totalorder %s869_s21, %s685_s30 }
  0x1d   : > { %609 = vmatpush3.msra.mxu1 %v265_v12  ;;  %p688_p2 = scmp.lt.s32.totalorder %s686_s4, %s680_s29 }
  0x1e   : > { %606 = vmatmul.mubr.msk.f32.vlgmr.msra.gmra.mrb[0].mxu0 %vm261_vm0, %v263_v2 }
  0x1f   : > { %p689_p3 = por %p688_p2, %p687_p1 }
  0x21   : > { %p690_p5 = pnand %p689_p3, %p683_p0 }
  0xf1   : > { %v339_v4 = vpop.f32.mrb[0].mxu0 }
  0xf2   : > { %v607_v5 = vpop.f32.mrb[1].mxu0  ;;  %v345_v6 = vsel %vm344_vm3, %v339_v4, -inf }
  0xf3   : > { %346 = vmax.xlane.f32.xlu0 %v345_v6 }
 0x180   : > { %v347_v9 = vpop.xlane.xlu0 %346 }
 0x181   : > { %v348_v10 = vmax.f32 %v343_v8, %v347_v9 }
 0x183   : > { %v349_v11 = vsub.f32 %v343_v8, %v348_v10  ;;  %450 = vst.msk [vmem:[#allocation2] sm:$0xff] %vm258_vm2, %v348_v10  ;;  %354 = vperm.xlu0 %672, %v348_v10  }
 0x185   : > { %v350_v18 = vmul.f32 1.442695, %v349_v11 }
 0x202   : > { %v355_v13 = vpop.permute.xlu0 %354 }
 0x203   : > { %v357_v14 = vsub.f32 %v339_v4, %v355_v13 }
 0x205   : > { %v358_v15 = vmul.f32 1.442695, %v357_v14 }
 0x207   : > { %674 = vpow2.f32 %v358_v15 }
 0x208   : > { %676 = vpow2.f32 %v350_v18 }
 0x211   : > { %v675_v16 = vpop.eup %674 }
 0x212   : > { %611 = vmatmul.mubr.msk.f32.vlgmr.msra.gmra.mrb[0].mxu1 %vm344_vm3, %v675_v16  ;;  %v362_v17 = vsel %vm344_vm3, %v675_v16, 0.0  ;;  %v677_v19 = vpop.eup %676 }
 0x213   : > { %363 = vadd.xlane.f32.xlu1 %v362_v17  ;;  %v361_v21 = vmul.f32 %v677_v19, %v360_v20 }
 0x224   : > { %371 = vperm.xlu1 %673, %v677_v19  }
 0x2a0   : > { %v364_v22 = vpop.xlane.xlu1 %363 }
 0x2a1   : > { %v365_v23 = vadd.f32 %v364_v22, %v361_v21 }
 0x2a3   : > { %367 = vst.msk [vmem:[#allocation3] sm:$0xff] %vm258_vm2, %v365_v23 }
 0x2a4   : > { %v372_v27 = vpop.permute.xlu1 %371 }
 0x2a5   : > { %v374_v28 = vmul.f32 %v372_v27, %v368_v26 }
 0x2aa   : > { %v455_v24 = vld [vmem:[#allocation3] sm:$0xff] }
 0x2ab   : > { %678 = vrcp.f32 %v455_v24 }
 0x2b5   : > { %v679_v25 = vpop.eup %678 }
 0x2b6   : > { %459 = vperm.xlu1 %673, %v679_v25  }
 0x2e5   : > { %v444_v29 = vpop.f32.mrb[0].mxu1 }
 0x2e6   : > { %v448_v30 = vadd.f32 %v444_v29, %v374_v28  ;;  %v612_v31 = vpop.f32.mrb[1].mxu1 }
 0x2e8   : > { %449 = vst.msk [vmem:[#allocation4] sm:$0xff] %vm261_vm0, %v448_v30 }
 0x2ef   : > { %v454_v32 = vld [vmem:[#allocation4] sm:$0xff] }
 0x335   : > { %v460_v33 = vpop.permute.xlu1 %459 }
 0x336   : > { %v462_v34 = vmul.f32 %v460_v33, %v454_v32 }
 0x338   : > { %463 = vst.msk [vmem:[%s232_s19] sm:$0xff] %vm261_vm0, %v462_v34 }
 0x339   : > { %693 = shalt.err (!%p690_p5)
}
 0x33a   : > { %s694_s5 = scalar_lea.hbm %s867_s27, 128  ;;  %s698_s8 = scalar_lea.hbm %s918_s3, 256 }
 0x33b   : > { %p695_p6 = scmp.ne.s32.totalorder %s867_s27, %s694_s5  ;;  %p699_p10 = scmp.lt.u32.totalorder %s867_s27, %s918_s3 }
 0x33c   : > { %p700_p11 = scmp.lt.u32.totalorder %s698_s8, %s694_s5  ;;  %p702_p13 = scmp.lt.u32.totalorder %s694_s5, %s867_s27 }
 0x33d   : > { %p696_p7 = pnand %p695_p6, %p825_p4 }
 0x33e   : > { %p701_p12 = por %p700_p11, %p699_p10 }
 0x33f   : > { %p697_p9 = pneg %p696_p7 }
 0x340   : > { %p703_p0 = por %p702_p13, %p701_p12 }
 0x342   : > { %p704_p1 = pnand %p703_p0, %p697_p9 }
 0x344   : > { %707 = shalt.err (!%p704_p1)
}
 0x345   : > { %613 = dma.vmem_to_hbm [thread:$0]  (%p825_p4), %s869_s21, 128, %s867_s27, %s465_s28  }
 0x346 PF: > { %p619_p2 = scmp.ge.s32.totalorder %s758_s17, 2  ;;  %s491_s11 = sand.u32 1, %s738_s12  }
 0x347   : > { %s492_s18 = scalar_lea.sflag [#allocation6], %s491_s11 }
 0x348   : > { %p616_p3 = pnand %p619_p2, %p832_p8 }
 0x34a   : > { %733 = dma.done.wait (!%p616_p3), %s492_s18, 128  }
 0x34b   : > { %735 = vsyncadd (!%p616_p3), %s492_s18, 4294967168  ;;  %s16_s17 = sadd.s32 1, %s758_s17   ;;  %s921_s12 = smov %s742_s13 }
 0x34c   : > { %p13_p5 = scmp.ge.s32.totalorder %s16_s17, 4   ;;  %s922_s13 = smov %s746_s14 }
 0x34d   : > { %s923_s14 = smov %s838_s25  ;;  %s924_s15 = smov %s754_s16 }
 0x34e   : > { %s925_s16 = smov %s927_s20  ;;  %15 = sbr.rel (!%p13_p5) target bundleno = 4 (0x4), region = 81 }
 0x355   :  { %497 = vsyncpa [#allocation6], 1 }
 0x356   :  { %499 = vsyncpa [#allocation6 + $0x1], 1 }

// kernel: self_attention.2
= control target key start
LH: loop header
LB: loop body
LE: loop exit
PB: predicated region body
PF: predicated region fallthrough
CT: control target
= control target key end

     0   :  { %vm27_vm0 = vcmask 261120   ;;  %vm109_vm1 = vcmask 785408   ;;  %s191_s1 = inlined_call_operand.vmem [shape: f32[32,96], index: 1, kind: input, shape index: {}]   ;;  %s192_s0 = inlined_call_operand.vmem [shape: f32[16,32], index: 0, kind: input, shape index: {}]   ;;  %s193_s2 = inlined_call_operand.vmem [shape: f32[1,96], index: 2, kind: input, shape index: {}]   ;;  %s194_s3 = inlined_call_operand.vmem [shape: f32[16,96], index: 3, kind: output, shape index: {}]  }
   0x1   :  { %v16_v0 = vld [vmem:[%s191_s1] sm:$0xff]  ;;  %v17_v1 = vld [vmem:[%s191_s1 + $0x8] sm:$0xff]  ;;  %v18_v2 = vld [vmem:[%s191_s1 + $0x10] sm:$0xff] }
   0x2   :  { %v136_v3 = vpack.c.bf16 %v17_v1, %v16_v0  ;;  %v19_v4 = vld [vmem:[%s191_s1 + $0x18] sm:$0xff]  ;;  %v14_v5 = vld [vmem:[%s192_s0] sm:$0xff]  ;;  %v15_v7 = vld [vmem:[%s192_s0 + $0x8] sm:$0xff] }
   0x3   :  { %v140_v6 = vpack.c.bf16 %v19_v4, %v18_v2  ;;  %133 = vmatprep.mubr.msk.f32.mxu0 %vm27_vm0, %v14_v5  ;;  %v116_v8 = vld [vmem:[%s193_s2] ss:$0 sm:$0xff] }
   0x4   :  { %137 = vmatprep.subr.bf16.mxu0 %v136_v3 }
   0x5   :  { %139 = vmatpush3.bf16.msra.mxu0 %v136_v3 }
   0x6   :  { %141 = vmatprep.subr.bf16.mxu0 %v140_v6 }
   0x9   :  { %143 = vmatpush3.bf16.msra.mxu0 %v140_v6 }
   0xc   :  { %134 = vmatmul.mubr.msk.f32.vlgmr.msra.gmra.mrb[0].mxu0 %vm27_vm0, %v15_v7 }
  0xdf   :  { %v135_v9 = vpop.f32.mrb[0].mxu0 }
  0xe0   :  { %v106_v10 = vadd.f32 %v135_v9, %v116_v8  ;;  %v100_v11 = vpop.f32.mrb[1].mxu0 }
  0xe1   :  { %v101_v12 = vadd.f32 %v116_v8, %v100_v11 }
  0xe2   :  { %111 = vst.msk [vmem:[%s194_s3 + $0x8] sm:$0xff] %vm109_vm1, %v106_v10 }
  0xe3   :  { %110 = vst.msk [vmem:[%s194_s3] sm:$0xff] %vm109_vm1, %v101_v12 }

</bundles_post_ra>
